<compile_context>
chip_gen: v7x
topology: tpu7x:2x2x1
jax: 0.10.0
libtpu: 0.0.40
codegen_flags: <defaults>
</compile_context>

<pallas_src>
import jax
import jax.numpy as jnp
from jax import lax
from jax.experimental import pallas as pl
from jax.experimental.pallas import tpu as pltpu

BN_EPS = 1e-5       # nn.BatchNorm1d default eps
NORM_EPS = 1e-12    # F.normalize default eps


def byol_kernel(x1_ref, x2_ref, wb_ref, bb_ref, w1_ref, b1_ref, g_ref, be_ref,
                w2_ref, b2_ref, loss_ref, feat_acc):
    k = pl.program_id(0)
    nk = pl.num_programs(0)

    # ---- init accumulator on the first K step ----
    @pl.when(k == 0)
    def _():
        feat_acc[...] = jnp.zeros_like(feat_acc)

    # ---- backbone matmul, K-tiled, both branches fused into ONE dot ----
    # x1/x2 tiles arrive f32 (no wrapper cast); concat rows -> [2B, tk], cast
    # to bf16 once, single MXU RHS push of the wb tile per K step.
    x = jnp.concatenate([x1_ref[...], x2_ref[...]], axis=0).astype(jnp.bfloat16)
    feat_acc[...] += jnp.dot(x, wb_ref[...], preferred_element_type=jnp.float32)

    # ---- last K step: bias+ReLU, projector, batch-stat BN, loss ----
    @pl.when(k == nk - 1)
    def _():
        two_b = feat_acc.shape[0]            # 2B (static)
        b_rows = two_b // 2
        inv_2b = 1.0 / float(two_b)
        inv_b = 1.0 / float(b_rows)

        feat = jnp.maximum(feat_acc[...] + bb_ref[...], 0.0)   # [2B, F] f32

        # Target branch: deepcopy of the online backbone at first forward,
        # no projector on the target side; detach == just values.
        tgt = feat

        # -- online projector: Linear -> BatchNorm1d(batch stats) -> ReLU -> Linear --
        h = jnp.dot(feat.astype(jnp.bfloat16), w1_ref[...],
                    preferred_element_type=jnp.float32) + b1_ref[...]   # [2B, H]

        # BN statistics over the full 2B batch; cross-sublane sums run on the
        # XLU (MXU stays free for the projector dots).
        mu = jnp.sum(h, axis=0, keepdims=True) * inv_2b
        var = jnp.sum(h * h, axis=0, keepdims=True) * inv_2b - mu * mu
        var = jnp.maximum(var, 0.0)          # guard f32 cancellation -> NaN in rsqrt
        scale = g_ref[...] * lax.rsqrt(var + BN_EPS)
        shift = be_ref[...] - mu * scale
        h = jnp.maximum(h * scale + shift, 0.0)

        proj = jnp.dot(h.astype(jnp.bfloat16), w2_ref[...],
                       preferred_element_type=jnp.float32) + b2_ref[...]  # [2B, F]

        # -- loss_fn(x, y) = 2 * (1 - sum(normalize(x)*normalize(y), -1)) --
        def l2_normalize(v):
            sumsq = jnp.sum(v * v, axis=-1, keepdims=True)
            # clamp the SQUARED norm at eps^2 to preserve F.normalize(eps=1e-12)
            return v * lax.rsqrt(jnp.maximum(sumsq, NORM_EPS * NORM_EPS))

        p_n = l2_normalize(proj)
        t_n = l2_normalize(tgt)

        # loss_one pairs online view-1 with target view-2, loss_two the reverse.
        loss_one = 2.0 * (1.0 - jnp.sum(p_n[:b_rows] * t_n[b_rows:],
                                        axis=-1, keepdims=True))
        loss_two = 2.0 * (1.0 - jnp.sum(p_n[b_rows:] * t_n[:b_rows],
                                        axis=-1, keepdims=True))

        loss = jnp.sum(loss_one + loss_two) * inv_b      # (loss_one+loss_two).mean()
        # lane-dense (1,128) scalar slab — broadcast, unmasked vst
        loss_ref[...] = jnp.broadcast_to(loss, loss_ref.shape).astype(loss_ref.dtype)


def init_params(key, d_in, feat_dim, hidden_dim):
    """Matmul weights are stored in bf16 ONCE here (no per-call wrapper casts)."""
    ks = jax.random.split(key, 3)

    def scale(fan_in):
        return 1.0 / jnp.sqrt(jnp.float32(fan_in))

    return dict(
        # backbone linear encoder (stand-in for the injected ResNet backbone)
        wb=(jax.random.normal(ks[0], (d_in, feat_dim), jnp.float32)
            * scale(d_in)).astype(jnp.bfloat16),
        bb=jnp.zeros((1, feat_dim), jnp.float32),
        # projector hidden linear
        w1=(jax.random.normal(ks[1], (feat_dim, hidden_dim), jnp.float32)
            * scale(feat_dim)).astype(jnp.bfloat16),
        b1=jnp.zeros((1, hidden_dim), jnp.float32),
        # projector batchnorm affine
        gamma=jnp.ones((1, hidden_dim), jnp.float32),
        beta=jnp.zeros((1, hidden_dim), jnp.float32),
        # projector output linear (out dim == feat dim so loss shapes match)
        w2=(jax.random.normal(ks[2], (hidden_dim, feat_dim), jnp.float32)
            * scale(hidden_dim)).astype(jnp.bfloat16),
        b2=jnp.zeros((1, feat_dim), jnp.float32),
    )


def _vmem_limit_bytes(batch, tk, feat, hidden):
    """Explicit scoped-VMEM budget: tiles + single-buffered residents + scratch."""
    two_b = 2 * batch
    x_tiles = 2 * 2 * batch * tk * 4              # x1,x2 f32 tiles, double-buffered
    wb_tiles = 2 * tk * feat * 2                  # wb bf16 tile, double-buffered
    residents = 2 * feat * hidden * 2             # w1,w2 bf16, single-buffered
    vectors = 2 * (2 * feat + 3 * hidden) * 4     # bias/BN rows, double-buffered
    acc = two_b * feat * 4                        # f32 accumulator scratch
    epilogue = 3 * two_b * hidden * 4 + 4 * two_b * feat * 4   # h/proj temporaries
    out = 2 * 128 * 4
    total = x_tiles + wb_tiles + residents + vectors + acc + epilogue + out
    return min(int(total * 1.5) + (8 << 20), 64 << 20)         # headroom, <= 64 MiB


def byol_forward(x1, x2, params, *, tk=2048):
    batch = x1.shape[0]
    d_in = x1.shape[1] * x1.shape[2] * x1.shape[3]
    feat = params["wb"].shape[1]
    hidden = params["w1"].shape[1]

    # Flatten each view separately (free, contiguous reshape) — no concat copy
    # and NO dtype cast in the wrapper (the kernel casts its K-tile to bf16).
    x1f = x1.reshape(batch, d_in)
    x2f = x2.reshape(batch, d_in)

    tk = min(tk, d_in)
    assert d_in % tk == 0 and tk % 128 == 0, "d_in must tile by a 128-multiple tk"
    nk = d_in // tk

    resident = pl.Buffered(1)   # constant-index weights: no double-buffering

    grid_spec = pltpu.PrefetchScalarGridSpec(
        num_scalar_prefetch=0,
        grid=(nk,),
        in_specs=[
            pl.BlockSpec((batch, tk), lambda k: (0, k)),          # x1 (K-tiled, f32)
            pl.BlockSpec((batch, tk), lambda k: (0, k)),          # x2 (K-tiled, f32)
            pl.BlockSpec((tk, feat), lambda k: (k, 0)),           # wb (streamed, pipelined)
            pl.BlockSpec((1, feat), lambda k: (0, 0)),            # bb
            pl.BlockSpec((feat, hidden), lambda k: (0, 0),        # w1 (resident, 1-buf)
                         pipeline_mode=resident),
            pl.BlockSpec((1, hidden), lambda k: (0, 0)),          # b1
            pl.BlockSpec((1, hidden), lambda k: (0, 0)),          # gamma
            pl.BlockSpec((1, hidden), lambda k: (0, 0)),          # beta
            pl.BlockSpec((hidden, feat), lambda k: (0, 0),        # w2 (resident, 1-buf)
                         pipeline_mode=resident),
            pl.BlockSpec((1, feat), lambda k: (0, 0)),            # b2
        ],
        out_specs=pl.BlockSpec((1, 128), lambda k: (0, 0)),
        scratch_shapes=[
            pltpu.VMEM((2 * batch, feat), jnp.float32),           # fused feat accumulator
        ],
    )

    out = pl.pallas_call(
        byol_kernel,
        out_shape=jax.ShapeDtypeStruct((1, 128), jnp.float32),
        grid_spec=grid_spec,
        compiler_params=pltpu.CompilerParams(
            dimension_semantics=("arbitrary",),   # K axis carries the accumulator
            vmem_limit_bytes=_vmem_limit_bytes(batch, tk, feat, hidden)),
    )(x1f, x2f, params["wb"], params["bb"], params["w1"], params["b1"],
      params["gamma"], params["beta"], params["w2"], params["b2"])
    return out[0, 0]


if __name__ == "__main__":
    # Small shapes consistent with the module's forward:
    B, C, H, W = 2, 4, 16, 16
    D_IN = C * H * W            # 1024
    FEAT = 128                  # backbone feature dim (512 in the real model)
    HIDDEN = 512                # projector hidden dim (4096 in the real model)

    key = jax.random.PRNGKey(0)
    k1, k2, kp = jax.random.split(key, 3)
    x1 = jax.random.normal(k1, (B, C, H, W), jnp.float32)
    x2 = jax.random.normal(k2, (B, C, H, W), jnp.float32)

    params = init_params(kp, D_IN, FEAT, HIDDEN)

    loss = byol_forward(x1, x2, params)
    jax.block_until_ready(loss)
    assert loss.shape == () and bool(jnp.isfinite(loss))
    print("KERNEL_OK")
</pallas_src>

<mosaic_0001>
module attributes {stable_mosaic.version = 11 : i64} {
  func.func @byol_kernel(%arg0: i32, %arg1: memref<2x1024xf32, #tpu.memory_space<vmem>>, %arg2: memref<2x1024xf32, #tpu.memory_space<vmem>>, %arg3: memref<1024x128xbf16, #tpu.memory_space<vmem>>, %arg4: memref<1x128xf32, #tpu.memory_space<vmem>>, %arg5: memref<128x512xbf16, #tpu.memory_space<vmem>>, %arg6: memref<1x512xf32, #tpu.memory_space<vmem>>, %arg7: memref<1x512xf32, #tpu.memory_space<vmem>>, %arg8: memref<1x512xf32, #tpu.memory_space<vmem>>, %arg9: memref<512x128xbf16, #tpu.memory_space<vmem>>, %arg10: memref<1x128xf32, #tpu.memory_space<vmem>>, %arg11: memref<1x128xf32, #tpu.memory_space<vmem>>, %arg12: memref<4x128xf32, #tpu.memory_space<vmem>>) attributes {dimension_semantics = [#tpu.dimension_semantics<arbitrary>], iteration_bounds = array<i64: 1>, scalar_prefetch = 0 : i64, scratch_operands = 1 : i64, tpu.core_type = #tpu.core_type<tc>, window_params = [{transform_indices = @transform_0, window_bounds = array<i64: 2, 1024>}, {transform_indices = @transform_1, window_bounds = array<i64: 2, 1024>}, {transform_indices = @transform_2, window_bounds = array<i64: 1024, 128>}, {pipeline_mode = #tpu.pipeline_mode<synchronous>, transform_indices = @transform_3, window_bounds = array<i64: 1, 128>}, {pipeline_mode = #tpu.pipeline_mode<synchronous>, transform_indices = @transform_4, window_bounds = array<i64: 128, 512>}, {pipeline_mode = #tpu.pipeline_mode<synchronous>, transform_indices = @transform_5, window_bounds = array<i64: 1, 512>}, {pipeline_mode = #tpu.pipeline_mode<synchronous>, transform_indices = @transform_6, window_bounds = array<i64: 1, 512>}, {pipeline_mode = #tpu.pipeline_mode<synchronous>, transform_indices = @transform_7, window_bounds = array<i64: 1, 512>}, {pipeline_mode = #tpu.pipeline_mode<synchronous>, transform_indices = @transform_8, window_bounds = array<i64: 512, 128>}, {pipeline_mode = #tpu.pipeline_mode<synchronous>, transform_indices = @transform_9, window_bounds = array<i64: 1, 128>}, {pipeline_mode = #tpu.pipeline_mode<synchronous>, transform_indices = @transform_10, window_bounds = array<i64: 1, 128>}]} {
    %c0_i32 = arith.constant 0 : i32
    %0 = arith.cmpi eq, %arg0, %c0_i32 : i32
    %1 = arith.extui %0 : i1 to i32
    %c0_i32_0 = arith.constant 0 : i32
    %2 = arith.cmpi ne, %1, %c0_i32_0 : i32
    scf.if %2 {
      %cst_12 = arith.constant 0.000000e+00 : f32
      %15 = vector.broadcast %cst_12 : f32 to vector<4x128xf32>
      %c0_13 = arith.constant 0 : index
      %c0_14 = arith.constant 0 : index
      %16 = vector.load %arg12[%c0_13, %c0_14] : memref<4x128xf32, #tpu.memory_space<vmem>>, vector<4x128xf32>
      tpu.vector_store %arg12[%c0_13, %c0_14], %15 {strides = array<i32>} : memref<4x128xf32, #tpu.memory_space<vmem>>, vector<4x128xf32>,
    } else {
    }
    %c0 = arith.constant 0 : index
    %c0_1 = arith.constant 0 : index
    %3 = vector.load %arg1[%c0, %c0_1] : memref<2x1024xf32, #tpu.memory_space<vmem>>, vector<2x1024xf32>
    %c0_2 = arith.constant 0 : index
    %c0_3 = arith.constant 0 : index
    %4 = vector.load %arg2[%c0_2, %c0_3] : memref<2x1024xf32, #tpu.memory_space<vmem>>, vector<2x1024xf32>
    %5 = tpu.concatenate %3, %4 in 0 : vector<2x1024xf32>, vector<2x1024xf32> -> vector<4x1024xf32>
    %6 = arith.truncf %5 : vector<4x1024xf32> to vector<4x1024xbf16>
    %c0_4 = arith.constant 0 : index
    %c0_5 = arith.constant 0 : index
    %7 = vector.load %arg12[%c0_4, %c0_5] : memref<4x128xf32, #tpu.memory_space<vmem>>, vector<4x128xf32>
    %c0_6 = arith.constant 0 : index
    %c0_7 = arith.constant 0 : index
    %8 = vector.load %arg3[%c0_6, %c0_7] : memref<1024x128xbf16, #tpu.memory_space<vmem>>, vector<1024x128xbf16>
    %cst = arith.constant dense<0.000000e+00> : vector<4x128xf32>
    %9 = tpu.matmul %6, %8, %cst {dimension_numbers = #tpu.dot_dimension_numbers<[1], [0], [0], [1], [0, 0, 1, 1], [], []>} : vector<4x1024xbf16>, vector<1024x128xbf16>, vector<4x128xf32> -> vector<4x128xf32>
    %10 = arith.addf %7, %9 : vector<4x128xf32>
    %c0_8 = arith.constant 0 : index
    %c0_9 = arith.constant 0 : index
    %11 = vector.load %arg12[%c0_8, %c0_9] : memref<4x128xf32, #tpu.memory_space<vmem>>, vector<4x128xf32>
    tpu.vector_store %arg12[%c0_8, %c0_9], %10 {strides = array<i32>} : memref<4x128xf32, #tpu.memory_space<vmem>>, vector<4x128xf32>,
    %c0_i32_10 = arith.constant 0 : i32
    %12 = arith.cmpi eq, %arg0, %c0_i32_10 : i32
    %13 = arith.extui %12 : i1 to i32
    %c0_i32_11 = arith.constant 0 : i32
    %14 = arith.cmpi ne, %13, %c0_i32_11 : i32
    scf.if %14 {
      %c0_12 = arith.constant 0 : index
      %c0_13 = arith.constant 0 : index
      %15 = vector.load %arg12[%c0_12, %c0_13] : memref<4x128xf32, #tpu.memory_space<vmem>>, vector<4x128xf32>
      %c0_14 = arith.constant 0 : index
      %c0_15 = arith.constant 0 : index
      %16 = vector.load %arg4[%c0_14, %c0_15] : memref<1x128xf32, #tpu.memory_space<vmem>>, vector<1x128xf32>
      %17 = vector.broadcast %16 : vector<1x128xf32> to vector<4x128xf32>
      %18 = arith.addf %15, %17 : vector<4x128xf32>
      %cst_16 = arith.constant 0.000000e+00 : f32
      %19 = vector.broadcast %cst_16 : f32 to vector<4x128xf32>
      %20 = arith.maximumf %18, %19 : vector<4x128xf32>
      %21 = arith.truncf %20 : vector<4x128xf32> to vector<4x128xbf16>
      %c0_17 = arith.constant 0 : index
      %c0_18 = arith.constant 0 : index
      %22 = vector.load %arg5[%c0_17, %c0_18] : memref<128x512xbf16, #tpu.memory_space<vmem>>, vector<128x512xbf16>
      %cst_19 = arith.constant dense<0.000000e+00> : vector<4x512xf32>
      %23 = tpu.matmul %21, %22, %cst_19 {dimension_numbers = #tpu.dot_dimension_numbers<[1], [0], [0], [1], [0, 0, 1, 1], [], []>} : vector<4x128xbf16>, vector<128x512xbf16>, vector<4x512xf32> -> vector<4x512xf32>
      %c0_20 = arith.constant 0 : index
      %c0_21 = arith.constant 0 : index
      %24 = vector.load %arg6[%c0_20, %c0_21] : memref<1x512xf32, #tpu.memory_space<vmem>>, vector<1x512xf32>
      %25 = vector.broadcast %24 : vector<1x512xf32> to vector<4x512xf32>
      %26 = arith.addf %23, %25 : vector<4x512xf32>
      %cst_22 = arith.constant dense<0.000000e+00> : vector<512xf32>
      %27 = vector.multi_reduction <add>, %26, %cst_22 [0] : vector<4x512xf32> to vector<512xf32>
      %28 = vector.shape_cast %27 : vector<512xf32> to vector<1x512xf32>
      %cst_23 = arith.constant 2.500000e-01 : f32
      %29 = vector.broadcast %cst_23 : f32 to vector<1x512xf32>
      %30 = arith.mulf %28, %29 : vector<1x512xf32>
      %31 = arith.mulf %26, %26 : vector<4x512xf32>
      %cst_24 = arith.constant dense<0.000000e+00> : vector<512xf32>
      %32 = vector.multi_reduction <add>, %31, %cst_24 [0] : vector<4x512xf32> to vector<512xf32>
      %33 = vector.shape_cast %32 : vector<512xf32> to vector<1x512xf32>
      %cst_25 = arith.constant 2.500000e-01 : f32
      %34 = vector.broadcast %cst_25 : f32 to vector<1x512xf32>
      %35 = arith.mulf %33, %34 : vector<1x512xf32>
      %36 = arith.mulf %30, %30 : vector<1x512xf32>
      %37 = arith.subf %35, %36 : vector<1x512xf32>
      %cst_26 = arith.constant 0.000000e+00 : f32
      %38 = vector.broadcast %cst_26 : f32 to vector<1x512xf32>
      %39 = arith.maximumf %37, %38 : vector<1x512xf32>
      %c0_27 = arith.constant 0 : index
      %c0_28 = arith.constant 0 : index
      %40 = vector.load %arg7[%c0_27, %c0_28] : memref<1x512xf32, #tpu.memory_space<vmem>>, vector<1x512xf32>
      %cst_29 = arith.constant 9.99999974E-6 : f32
      %41 = vector.broadcast %cst_29 : f32 to vector<1x512xf32>
      %42 = arith.addf %39, %41 : vector<1x512xf32>
      %43 = math.rsqrt %42 : vector<1x512xf32>
      %44 = arith.mulf %40, %43 : vector<1x512xf32>
      %c0_30 = arith.constant 0 : index
      %c0_31 = arith.constant 0 : index
      %45 = vector.load %arg8[%c0_30, %c0_31] : memref<1x512xf32, #tpu.memory_space<vmem>>, vector<1x512xf32>
      %46 = arith.mulf %30, %44 : vector<1x512xf32>
      %47 = arith.subf %45, %46 : vector<1x512xf32>
      %48 = vector.broadcast %44 : vector<1x512xf32> to vector<4x512xf32>
      %49 = arith.mulf %26, %48 : vector<4x512xf32>
      %50 = vector.broadcast %47 : vector<1x512xf32> to vector<4x512xf32>
      %51 = arith.addf %49, %50 : vector<4x512xf32>
      %cst_32 = arith.constant 0.000000e+00 : f32
      %52 = vector.broadcast %cst_32 : f32 to vector<4x512xf32>
      %53 = arith.maximumf %51, %52 : vector<4x512xf32>
      %54 = arith.truncf %53 : vector<4x512xf32> to vector<4x512xbf16>
      %c0_33 = arith.constant 0 : index
      %c0_34 = arith.constant 0 : index
      %55 = vector.load %arg9[%c0_33, %c0_34] : memref<512x128xbf16, #tpu.memory_space<vmem>>, vector<512x128xbf16>
      %cst_35 = arith.constant dense<0.000000e+00> : vector<4x128xf32>
      %56 = tpu.matmul %54, %55, %cst_35 {dimension_numbers = #tpu.dot_dimension_numbers<[1], [0], [0], [1], [0, 0, 1, 1], [], []>} : vector<4x512xbf16>, vector<512x128xbf16>, vector<4x128xf32> -> vector<4x128xf32>
      %c0_36 = arith.constant 0 : index
      %c0_37 = arith.constant 0 : index
      %57 = vector.load %arg10[%c0_36, %c0_37] : memref<1x128xf32, #tpu.memory_space<vmem>>, vector<1x128xf32>
      %58 = vector.broadcast %57 : vector<1x128xf32> to vector<4x128xf32>
      %59 = arith.addf %56, %58 : vector<4x128xf32>
      %60 = arith.mulf %59, %59 : vector<4x128xf32>
      %cst_38 = arith.constant dense<0.000000e+00> : vector<4xf32>
      %61 = vector.multi_reduction <add>, %60, %cst_38 [1] : vector<4x128xf32> to vector<4xf32>
      %62 = vector.shape_cast %61 : vector<4xf32> to vector<4x1xf32>
      %cst_39 = arith.constant 1.000000e-24 : f32
      %63 = vector.broadcast %cst_39 : f32 to vector<4x1xf32>
      %64 = arith.maximumf %62, %63 : vector<4x1xf32>
      %65 = math.rsqrt %64 : vector<4x1xf32>
      %66 = vector.broadcast %65 : vector<4x1xf32> to vector<4x128xf32>
      %67 = arith.mulf %59, %66 : vector<4x128xf32>
      %68 = arith.mulf %20, %20 : vector<4x128xf32>
      %cst_40 = arith.constant dense<0.000000e+00> : vector<4xf32>
      %69 = vector.multi_reduction <add>, %68, %cst_40 [1] : vector<4x128xf32> to vector<4xf32>
      %70 = vector.shape_cast %69 : vector<4xf32> to vector<4x1xf32>
      %cst_41 = arith.constant 1.000000e-24 : f32
      %71 = vector.broadcast %cst_41 : f32 to vector<4x1xf32>
      %72 = arith.maximumf %70, %71 : vector<4x1xf32>
      %73 = math.rsqrt %72 : vector<4x1xf32>
      %74 = vector.broadcast %73 : vector<4x1xf32> to vector<4x128xf32>
      %75 = arith.mulf %20, %74 : vector<4x128xf32>
      %76 = vector.extract_strided_slice %67 {offsets = [0, 0], sizes = [2, 128], strides = [1, 1]} : vector<4x128xf32> to vector<2x128xf32>
      %77 = vector.extract_strided_slice %75 {offsets = [2, 0], sizes = [2, 128], strides = [1, 1]} : vector<4x128xf32> to vector<2x128xf32>
      %78 = arith.mulf %76, %77 : vector<2x128xf32>
      %cst_42 = arith.constant dense<0.000000e+00> : vector<2xf32>
      %79 = vector.multi_reduction <add>, %78, %cst_42 [1] : vector<2x128xf32> to vector<2xf32>
      %80 = vector.shape_cast %79 : vector<2xf32> to vector<2x1xf32>
      %cst_43 = arith.constant 1.000000e+00 : f32
      %81 = vector.broadcast %cst_43 : f32 to vector<2x1xf32>
      %82 = arith.subf %81, %80 : vector<2x1xf32>
      %cst_44 = arith.constant 2.000000e+00 : f32
      %83 = vector.broadcast %cst_44 : f32 to vector<2x1xf32>
      %84 = arith.mulf %83, %82 : vector<2x1xf32>
      %85 = vector.extract_strided_slice %67 {offsets = [2, 0], sizes = [2, 128], strides = [1, 1]} : vector<4x128xf32> to vector<2x128xf32>
      %86 = vector.extract_strided_slice %75 {offsets = [0, 0], sizes = [2, 128], strides = [1, 1]} : vector<4x128xf32> to vector<2x128xf32>
      %87 = arith.mulf %85, %86 : vector<2x128xf32>
      %cst_45 = arith.constant dense<0.000000e+00> : vector<2xf32>
      %88 = vector.multi_reduction <add>, %87, %cst_45 [1] : vector<2x128xf32> to vector<2xf32>
      %89 = vector.shape_cast %88 : vector<2xf32> to vector<2x1xf32>
      %cst_46 = arith.constant 1.000000e+00 : f32
      %90 = vector.broadcast %cst_46 : f32 to vector<2x1xf32>
      %91 = arith.subf %90, %89 : vector<2x1xf32>
      %cst_47 = arith.constant 2.000000e+00 : f32
      %92 = vector.broadcast %cst_47 : f32 to vector<2x1xf32>
      %93 = arith.mulf %92, %91 : vector<2x1xf32>
      %94 = arith.addf %84, %93 : vector<2x1xf32>
      %95 = vector.shape_cast %94 : vector<2x1xf32> to vector<1x2x1xf32>
      %cst_48 = arith.constant dense<0.000000e+00> : vector<1xf32>
      %96 = vector.multi_reduction <add>, %95, %cst_48 [1, 2] : vector<1x2x1xf32> to vector<1xf32>
      %97 = vector.shape_cast %96 : vector<1xf32> to vector<1x1x1xf32>
      %98 = vector.extract %97[0, 0, 0] : f32 from vector<1x1x1xf32>
      %cst_49 = arith.constant 5.000000e-01 : f32
      %99 = arith.mulf %98, %cst_49 : f32
      %100 = vector.broadcast %99 : f32 to vector<1x128xf32>
      %c0_50 = arith.constant 0 : index
      %c0_51 = arith.constant 0 : index
      %101 = vector.load %arg11[%c0_50, %c0_51] : memref<1x128xf32, #tpu.memory_space<vmem>>, vector<1x128xf32>
      tpu.vector_store %arg11[%c0_50, %c0_51], %100 {strides = array<i32>} : memref<1x128xf32, #tpu.memory_space<vmem>>, vector<1x128xf32>,
    } else {
    }
    return
  }
  func.func @transform_0(%arg0: i32) -> (i32, i32) {
    %c0_i32 = arith.constant 0 : i32
    %c0_i32_0 = arith.constant 0 : i32
    return %c0_i32, %arg0 : i32, i32
  }
  func.func @transform_1(%arg0: i32) -> (i32, i32) {
    %c0_i32 = arith.constant 0 : i32
    %c0_i32_0 = arith.constant 0 : i32
    return %c0_i32, %arg0 : i32, i32
  }
  func.func @transform_2(%arg0: i32) -> (i32, i32) {
    %c0_i32 = arith.constant 0 : i32
    %c0_i32_0 = arith.constant 0 : i32
    return %arg0, %c0_i32 : i32, i32
  }
  func.func @transform_3(%arg0: i32) -> (i32, i32) {
    %c0_i32 = arith.constant 0 : i32
    %c0_i32_0 = arith.constant 0 : i32
    %c0_i32_1 = arith.constant 0 : i32
    return %c0_i32, %c0_i32_0 : i32, i32
  }
  func.func @transform_4(%arg0: i32) -> (i32, i32) {
    %c0_i32 = arith.constant 0 : i32
    %c0_i32_0 = arith.constant 0 : i32
    %c0_i32_1 = arith.constant 0 : i32
    return %c0_i32, %c0_i32_0 : i32, i32
  }
  func.func @transform_5(%arg0: i32) -> (i32, i32) {
    %c0_i32 = arith.constant 0 : i32
    %c0_i32_0 = arith.constant 0 : i32
    %c0_i32_1 = arith.constant 0 : i32
    return %c0_i32, %c0_i32_0 : i32, i32
  }
  func.func @transform_6(%arg0: i32) -> (i32, i32) {
    %c0_i32 = arith.constant 0 : i32
    %c0_i32_0 = arith.constant 0 : i32
    %c0_i32_1 = arith.constant 0 : i32
    return %c0_i32, %c0_i32_0 : i32, i32
  }
  func.func @transform_7(%arg0: i32) -> (i32, i32) {
    %c0_i32 = arith.constant 0 : i32
    %c0_i32_0 = arith.constant 0 : i32
    %c0_i32_1 = arith.constant 0 : i32
    return %c0_i32, %c0_i32_0 : i32, i32
  }
  func.func @transform_8(%arg0: i32) -> (i32, i32) {
    %c0_i32 = arith.constant 0 : i32
    %c0_i32_0 = arith.constant 0 : i32
    %c0_i32_1 = arith.constant 0 : i32
    return %c0_i32, %c0_i32_0 : i32, i32
  }
  func.func @transform_9(%arg0: i32) -> (i32, i32) {
    %c0_i32 = arith.constant 0 : i32
    %c0_i32_0 = arith.constant 0 : i32
    %c0_i32_1 = arith.constant 0 : i32
    return %c0_i32, %c0_i32_0 : i32, i32
  }
  func.func @transform_10(%arg0: i32) -> (i32, i32) {
    %c0_i32 = arith.constant 0 : i32
    %c0_i32_0 = arith.constant 0 : i32
    %c0_i32_1 = arith.constant 0 : i32
    return %c0_i32, %c0_i32_0 : i32, i32
  }
}

</mosaic_0001>

<bundles_post_ra>
// kernel: tpu_custom_call.1
= control target key start
LH: loop header
LB: loop body
LE: loop exit
PB: predicated region body
PF: predicated region fallthrough
CT: control target
= control target key end

     0   :  { %15 = vsyncpa [#allocation4], 0  ;;  %s2659_s0 = inlined_call_operand.hbm [shape: f32[2,1024], index: 0, kind: input, shape index: {}]   ;;  %s2660_s1 = inlined_call_operand.hbm [shape: f32[2,1024], index: 1, kind: input, shape index: {}]   ;;  %s2661_s2 = inlined_call_operand.hbm [shape: bf16[1024,128], index: 2, kind: input, shape index: {}]   ;;  %s2662_s3 = inlined_call_operand.vmem [shape: f32[1,128], index: 3, kind: input, shape index: {}]   ;;  %s2663_s4 = inlined_call_operand.hbm [shape: bf16[128,512], index: 4, kind: input, shape index: {}]   ;;  %s2664_s5 = inlined_call_operand.vmem [shape: f32[1,512], index: 5, kind: input, shape index: {}]   ;;  %s2665_s6 = inlined_call_operand.vmem [shape: f32[1,512], index: 6, kind: input, shape index: {}]   ;;  %s2666_s7 = inlined_call_operand.vmem [shape: f32[1,512], index: 7, kind: input, shape index: {}]   ;;  %s2667_s8 = inlined_call_operand.hbm [shape: bf16[512,128], index: 8, kind: input, shape index: {}]   ;;  %s2668_s9 = inlined_call_operand.vmem [shape: f32[1,128], index: 9, kind: input, shape index: {}]   ;;  %s2669_s10 = inlined_call_operand.hbm [shape: f32[1,128], index: 10, kind: output, shape index: {}]  }
   0x1   :  { %16 = vsyncpa [#allocation7], 0 }
   0x2   :  { %17 = vsyncpa [#allocation10], 0 }
   0x3   :  { %18 = vsyncpa [#allocation5], 0  ;;  %s2401_s13 = smov [#allocation6]   ;;  %s2402_s15 = smov [#allocation9]  }
   0x4   :  { %s35_s14 = sshll.u32 %s2401_s13, 4  ;;  %s58_s16 = sshll.u32 %s2402_s15, 4  ;;  %s36_s14 = int_to_ptr.vmem [resolvable:$true] %s35_s14  ;;  %s2470_s16 = int_to_ptr.vmem [resolvable:$true] %s58_s16 }
   0x5   :  { %s2261_s19 = scalar_lea.hbm %s2660_s1, 256 }
   0x6   :  { %p2262_p0 = scmp.ne.s32.totalorder %s2660_s1, %s2261_s19  ;;  %p2265_p1 = scmp.lt.u32.totalorder %s2261_s19, %s2660_s1 }
   0x8   :  { %p2267_p2 = pnand %p2265_p1, %p2262_p0 }
   0xa   :  { %2270 = shalt.err (!%p2267_p2)
}
   0xb   :  { %s2271_s24 = scalar_lea.vmem %s36_s14, 256  ;;  %p2276_p4 = scmp.lt.s32.totalorder %s36_s14, %s36_s14 }
   0xc   :  { %p2272_p3 = scmp.ne.s32.totalorder %s36_s14, %s2271_s24  ;;  %p2277_p5 = scmp.lt.s32.totalorder %s2271_s24, %s2271_s24 }
   0xe   :  { %p2278_p6 = por %p2277_p5, %p2276_p4 }
  0x10   :  { %p2279_p7 = pnand %p2278_p6, %p2272_p3 }
  0x12   :  { %2282 = shalt.err (!%p2279_p7)
}
  0x13   :  { %38 = dma.hbm_to_vmem [thread:$0]  %s2660_s1, 256, %s36_s14, [#allocation7]  }
  0x14   :  { %s2283_s29 = scalar_lea.hbm %s2663_s4, 4096 }
  0x15   :  { %p2284_p8 = scmp.ne.s32.totalorder %s2663_s4, %s2283_s29  ;;  %p2287_p9 = scmp.lt.u32.totalorder %s2283_s29, %s2663_s4 }
  0x17   :  { %p2289_p10 = pnand %p2287_p9, %p2284_p8 }
  0x19   :  { %2292 = shalt.err (!%p2289_p10)
}
  0x1a   :  { %s2293_s15 = scalar_lea.vmem %s2470_s16, 4096  ;;  %p2298_p12 = scmp.lt.s32.totalorder %s2470_s16, %s2470_s16 }
  0x1b   :  { %p2294_p11 = scmp.ne.s32.totalorder %s2470_s16, %s2293_s15  ;;  %p2299_p13 = scmp.lt.s32.totalorder %s2293_s15, %s2293_s15 }
  0x1d   :  { %p2300_p0 = por %p2299_p13, %p2298_p12 }
  0x1f   :  { %p2301_p1 = pnand %p2300_p0, %p2294_p11 }
  0x21   :  { %2304 = shalt.err (!%p2301_p1)
}
  0x22   :  { %s2403_s1 = smov 256   ;;  %s2404_s14 = smov 16  }
  0x23   :  { %64 = dma.hbm_to_vmem [thread:$0]  %s2663_s4, 4096, %s2470_s16, [#allocation10], %s2403_s1, %s2403_s1, %s2404_s14  }
  0x24   :  { %s2405_s19 = smov [#allocation3]   ;;  %s2406_s21 = smov [#allocation8]  }
  0x25   :  { %s25_s20 = sshll.u32 %s2405_s19, 4  ;;  %s44_s22 = sshll.u32 %s2406_s21, 4  ;;  %s26_s20 = int_to_ptr.vmem [resolvable:$true] %s25_s20  ;;  %s2501_s22 = int_to_ptr.vmem [resolvable:$true] %s44_s22 }
  0x26   :  { %s2305_s25 = scalar_lea.hbm %s2659_s0, 256 }
  0x27   :  { %p2306_p2 = scmp.ne.s32.totalorder %s2659_s0, %s2305_s25  ;;  %p2309_p3 = scmp.lt.u32.totalorder %s2305_s25, %s2659_s0 }
  0x29   :  { %p2311_p4 = pnand %p2309_p3, %p2306_p2 }
  0x2b   :  { %2314 = shalt.err (!%p2311_p4)
}
  0x2c   :  { %s2315_s4 = scalar_lea.vmem %s26_s20, 256  ;;  %p2320_p6 = scmp.lt.s32.totalorder %s26_s20, %s26_s20 }
  0x2d   :  { %p2316_p5 = scmp.ne.s32.totalorder %s26_s20, %s2315_s4  ;;  %p2321_p7 = scmp.lt.s32.totalorder %s2315_s4, %s2315_s4 }
  0x2f   :  { %p2322_p8 = por %p2321_p7, %p2320_p6 }
  0x31   :  { %p2323_p9 = pnand %p2322_p8, %p2316_p5 }
  0x33   :  { %2326 = shalt.err (!%p2323_p9)
}
  0x34   :  { %28 = dma.hbm_to_vmem [thread:$0]  %s2659_s0, 256, %s26_s20, [#allocation4]  }
  0x35   :  { %s2327_s13 = scalar_lea.hbm %s2661_s2, 8192 }
  0x36   :  { %p2328_p10 = scmp.ne.s32.totalorder %s2661_s2, %s2327_s13  ;;  %p2331_p11 = scmp.lt.u32.totalorder %s2327_s13, %s2661_s2 }
  0x38   :  { %p2333_p12 = pnand %p2331_p11, %p2328_p10 }
  0x3a   :  { %2336 = shalt.err (!%p2333_p12)
}
  0x3b   :  { %s2337_s18 = scalar_lea.vmem %s2501_s22, 8192  ;;  %p2342_p0 = scmp.lt.s32.totalorder %s2501_s22, %s2501_s22 }
  0x3c   :  { %p2338_p13 = scmp.ne.s32.totalorder %s2501_s22, %s2337_s18  ;;  %p2343_p1 = scmp.lt.s32.totalorder %s2337_s18, %s2337_s18 }
  0x3e   :  { %p2344_p2 = por %p2343_p1, %p2342_p0 }
  0x40   :  { %p2345_p3 = pnand %p2344_p2, %p2338_p13 }
  0x42   :  { %2348 = shalt.err (!%p2345_p3)
}
  0x43   :  { %s2407_s0 = smov 64   ;;  %s2408_s19 = smov 4  }
  0x44   :  { %50 = dma.hbm_to_vmem [thread:$0]  %s2661_s2, 8192, %s2501_s22, [#allocation7], %s2407_s0, %s2407_s0, %s2408_s19  }
  0x45   :  { %s2409_s23 = smov [#allocation11]   ;;  %s2349_s27 = scalar_lea.hbm %s2667_s8, 4096 }
  0x46   :  { %s76_s24 = sshll.u32 %s2409_s23, 4  ;;  %p2350_p4 = scmp.ne.s32.totalorder %s2667_s8, %s2349_s27  ;;  %s77_s24 = int_to_ptr.vmem [resolvable:$true] %s76_s24 }
  0x47   :  { %p2353_p5 = scmp.lt.u32.totalorder %s2349_s27, %s2667_s8 }
  0x49   :  { %p2355_p6 = pnand %p2353_p5, %p2350_p4 }
  0x4b   :  { %2358 = shalt.err (!%p2355_p6)
}
  0x4c   :  { %s2359_s30 = scalar_lea.vmem %s77_s24, 4096  ;;  %p2364_p8 = scmp.lt.s32.totalorder %s77_s24, %s77_s24 }
  0x4d   :  { %p2360_p7 = scmp.ne.s32.totalorder %s77_s24, %s2359_s30  ;;  %p2365_p9 = scmp.lt.s32.totalorder %s2359_s30, %s2359_s30 }
  0x4f   :  { %p2366_p10 = por %p2365_p9, %p2364_p8 }
  0x51   :  { %p2367_p11 = pnand %p2366_p10, %p2360_p7 }
  0x53   :  { %2370 = shalt.err (!%p2367_p11)
}
  0x54   :  { %82 = dma.hbm_to_vmem [thread:$0]  %s2667_s8, 4096, %s77_s24, [#allocation10], %s2407_s0, %s2407_s0, %s2408_s19  }
  0x55   :  { %2393 = dma.done.wait [#allocation4], 256  }
  0x56   :  { %2394 = vsyncadd [#allocation4], 4294967040 }
  0x57   :  { %2395 = dma.done.wait [#allocation7], 8448  }
  0x58   :  { %2396 = vsyncadd [#allocation7], 4294958848 }
  0x59   :  { %2397 = dma.done.wait [#allocation10], 8192  }
  0x5a   :  { %2398 = vsyncadd [#allocation10], 4294959104  ;;  %v2101_v0 = vld [vmem:[#allocation8 + $0x40] sm:$0xff]   ;;  %v2105_v4 = vld [vmem:[#allocation8 + $0x48] sm:$0xff]   ;;  %v2410_v22 = vmov 1983009808   ;;  %v116_v24 = vlaneseq }
  0x5b   :  { %v2102_v1 = vld [vmem:[#allocation8 + $0xc0] sm:$0xff]   ;;  %1953 = vmatprep.subr.bf16.mxu0 %v2101_v0  ;;  %v2106_v5 = vld [vmem:[#allocation8 + $0xc8] sm:$0xff]   ;;  %v2109_v8 = vld [vmem:[#allocation8 + $0x50] sm:$0xff]   ;;  %v114_v23 = vunpack.c.l.s4 %v2410_v22  ;;  %vm198_vm0 = vcmask 1041408   ;;  %vm1200_vm1 = vcmask 1043456   ;;  %vm1782_vm2 = vcmask 1043458  }
  0x5c   :  { %v2103_v2 = vld [vmem:[#allocation8] sm:$0xff]   ;;  %1975 = vmatprep.subr.bf16.mxu1 %v2102_v1  ;;  %v2107_v6 = vld [vmem:[#allocation8 + $0x8] sm:$0xff]   ;;  %v2110_v9 = vld [vmem:[#allocation8 + $0xd0] sm:$0xff]   ;;  %v2544_v30 = vshrl.u32 %v116_v24, 7  ;;  %vm1792_vm3 = vcmask 1024  }
  0x5d   :  { %v2104_v3 = vld [vmem:[#allocation8 + $0x80] sm:$0xff]   ;;  %1954 = vmatpush3.bf16.msra.mxu0 %v2103_v2  ;;  %v2108_v7 = vld [vmem:[#allocation8 + $0x88] sm:$0xff]   ;;  %v2111_v10 = vld [vmem:[#allocation8 + $0x10] sm:$0xff]   ;;  %v115_v29 = vunpack.c.0.s8 %v114_v23 }
  0x5e   :  { %1976 = vmatpush3.bf16.msra.mxu1 %v2104_v3  ;;  %1955 = vmatprep.subr.bf16.mxu0 %v2105_v4  ;;  %v2112_v11 = vld [vmem:[#allocation8 + $0x90] sm:$0xff]   ;;  %v2113_v12 = vld [vmem:[#allocation8 + $0x58] sm:$0xff]   ;;  %v2117_v16 = vld [vmem:[#allocation8 + $0x60] sm:$0xff]  }
  0x5f   :  { %1977 = vmatprep.subr.bf16.mxu1 %v2106_v5  ;;  %v2114_v13 = vld [vmem:[#allocation8 + $0xd8] sm:$0xff]   ;;  %v2118_v17 = vld [vmem:[#allocation8 + $0xe0] sm:$0xff]   ;;  %v2121_v20 = vld [vmem:[#allocation8 + $0x68] sm:$0xff]   ;;  %v2547_v35 = vsub.s32 %v115_v29, %v2544_v30 }
  0x60   :  { %v2115_v14 = vld [vmem:[#allocation8 + $0x18] sm:$0xff]   ;;  %v2119_v18 = vld [vmem:[#allocation8 + $0x20] sm:$0xff]   ;;  %v2122_v21 = vld [vmem:[#allocation8 + $0xe8] sm:$0xff]  }
  0x61   :  { %1956 = vmatpush3.bf16.msra.mxu0 %v2107_v6  ;;  %v2116_v15 = vld [vmem:[#allocation8 + $0x98] sm:$0xff]   ;;  %v2120_v19 = vld [vmem:[#allocation8 + $0xa0] sm:$0xff]   ;;  %v2123_v25 = vld [vmem:[#allocation8 + $0x28] sm:$0xff]  }
  0x62   :  { %1978 = vmatpush3.bf16.msra.mxu1 %v2108_v7  ;;  %1957 = vmatprep.subr.bf16.mxu0 %v2109_v8  ;;  %v2124_v26 = vld [vmem:[#allocation8 + $0xa8] sm:$0xff]   ;;  %v2125_v27 = vld [vmem:[#allocation8 + $0x70] sm:$0xff]   ;;  %v2129_v33 = vld [vmem:[#allocation8 + $0x78] sm:$0xff]  }
  0x63   :  { %1979 = vmatprep.subr.bf16.mxu1 %v2110_v9  ;;  %v2126_v28 = vld [vmem:[#allocation8 + $0xf0] sm:$0xff]   ;;  %v2130_v34 = vld [vmem:[#allocation8 + $0xf8] sm:$0xff]   ;;  %v106_v38 = vld [vmem:[#allocation3] sm:$0xff] }
  0x64   :  { %v2127_v31 = vld [vmem:[#allocation8 + $0x30] sm:$0xff]   ;;  %v2131_v36 = vld [vmem:[#allocation8 + $0x38] sm:$0xff]   ;;  %v119_v40 = vrot.slane %v106_v38, %v2547_v35  ;;  %v112_v42 = vcombine.high %v106_v38, %v106_v38  ;;  %v2135_v44 = vld [vmem:[#allocation8 + $0x140] sm:$0xff]  }
  0x65   :  { %1958 = vmatpush3.bf16.msra.mxu0 %v2111_v10  ;;  %v2128_v32 = vld [vmem:[#allocation8 + $0xb0] sm:$0xff]   ;;  %v2132_v37 = vld [vmem:[#allocation8 + $0xb8] sm:$0xff]   ;;  %v2136_v45 = vld [vmem:[#allocation8 + $0x1c0] sm:$0xff]  }
  0x66   :  { %1980 = vmatpush3.bf16.msra.mxu1 %v2112_v11  ;;  %1959 = vmatprep.subr.bf16.mxu0 %v2113_v12  ;;  %v108_v39 = vld [vmem:[#allocation6] sm:$0xff]  ;;  %v127_v46 = vcombine.high %v119_v40, %v119_v40  ;;  %v126_v48 = vrot.slane %v112_v42, %v2547_v35  ;;  %v2137_v54 = vld [vmem:[#allocation8 + $0x100] sm:$0xff]   ;;  %v2139_v62 = vld [vmem:[#allocation8 + $0x148] sm:$0xff]  }
  0x67   :  { %1981 = vmatprep.subr.bf16.mxu1 %v2114_v13  ;;  %v156_v41 = vcombine.low %v108_v39, %v108_v39  ;;  %v170_v43 = vrot.slane %v108_v39, %v2547_v35  ;;  %v2138_v59 = vld [vmem:[#allocation8 + $0x180] sm:$0xff]   ;;  %v2140_v63 = vld [vmem:[#allocation8 + $0x1c8] sm:$0xff]   ;;  %v2143_v2 = vld [vmem:[#allocation8 + $0x150] sm:$0xff]  }
  0x68   :  { %v128_v51 = vcombine.high %v126_v48, %v126_v48  ;;  %v2141_v0 = vld [vmem:[#allocation8 + $0x108] sm:$0xff]   ;;  %v2144_v3 = vld [vmem:[#allocation8 + $0x1d0] sm:$0xff]   ;;  %v2147_v6 = vld [vmem:[#allocation8 + $0x158] sm:$0xff]  }
  0x69   :  { %1960 = vmatpush3.bf16.msra.mxu0 %v2115_v14  ;;  %v163_v47 = vrot.slane %v156_v41, %v2547_v35  ;;  %v172_v49 = vcombine.high %v170_v43, %v170_v43  ;;  %v201_v53 = vsel %vm198_vm0, %v126_v48, %v170_v43  ;;  %v2142_v1 = vld [vmem:[#allocation8 + $0x188] sm:$0xff]   ;;  %v2145_v4 = vld [vmem:[#allocation8 + $0x110] sm:$0xff]   ;;  %v2148_v7 = vld [vmem:[#allocation8 + $0x1d8] sm:$0xff]  }
  0x6a   :  { %1982 = vmatpush3.bf16.msra.mxu1 %v2116_v15  ;;  %1961 = vmatprep.subr.bf16.mxu0 %v2117_v16  ;;  %v209_v58 = vpack.c.bf16 %v201_v53, %v201_v53  ;;  %v2146_v5 = vld [vmem:[#allocation8 + $0x190] sm:$0xff]   ;;  %v2149_v8 = vld [vmem:[#allocation8 + $0x118] sm:$0xff]   ;;  %v2151_v10 = vld [vmem:[#allocation8 + $0x160] sm:$0xff]  }
  0x6b   :  { %1983 = vmatprep.subr.bf16.mxu1 %v2118_v17  ;;  %v171_v50 = vcombine.high %v163_v47, %v163_v47  ;;  %v199_v52 = vsel %vm198_vm0, %v119_v40, %v163_v47  ;;  %v202_v56 = vsel %vm198_vm0, %v128_v51, %v172_v49  ;;  %v2150_v9 = vld [vmem:[#allocation8 + $0x198] sm:$0xff]   ;;  %v2152_v11 = vld [vmem:[#allocation8 + $0x1e0] sm:$0xff]   ;;  %v2155_v14 = vld [vmem:[#allocation8 + $0x168] sm:$0xff]  }
  0x6c   :  { %v207_v57 = vpack.c.bf16 %v199_v52, %v199_v52  ;;  %v210_v61 = vpack.c.bf16 %v202_v56, %v202_v56  ;;  %v2153_v12 = vld [vmem:[#allocation8 + $0x120] sm:$0xff]   ;;  %v2156_v15 = vld [vmem:[#allocation8 + $0x1e8] sm:$0xff]   ;;  %v2163_v22 = vld [vmem:[#allocation8 + $0x178] sm:$0xff]  }
  0x6d   :  { %1962 = vmatpush3.bf16.msra.mxu0 %v2119_v18  ;;  %v200_v55 = vsel %vm198_vm0, %v127_v46, %v171_v50  ;;  %v2154_v13 = vld [vmem:[#allocation8 + $0x1a0] sm:$0xff]   ;;  %v2157_v16 = vld [vmem:[#allocation8 + $0x128] sm:$0xff]   ;;  %v2159_v18 = vld [vmem:[#allocation8 + $0x170] sm:$0xff]  }
  0x6e   :  { %1984 = vmatpush3.bf16.msra.mxu1 %v2120_v19  ;;  %1963 = vmatprep.subr.bf16.mxu0 %v2121_v20  ;;  %v208_v60 = vpack.c.bf16 %v200_v55, %v200_v55  ;;  %v2158_v17 = vld [vmem:[#allocation8 + $0x1a8] sm:$0xff]   ;;  %v2160_v19 = vld [vmem:[#allocation8 + $0x1f0] sm:$0xff]   ;;  %v2164_v23 = vld [vmem:[#allocation8 + $0x1f8] sm:$0xff]  }
  0x6f   :  { %1985 = vmatprep.subr.bf16.mxu1 %v2122_v21  ;;  %800 = vmatprep.mubr.bf16.mxu1 %v210_v61  ;;  %v2161_v20 = vld [vmem:[#allocation8 + $0x130] sm:$0xff]   ;;  %v107_v24 = vld [vmem:[#allocation3 + $0x8] sm:$0xff]  ;;  %v2166_v29 = vld [vmem:[#allocation8 + $0x1b8] sm:$0xff]  }
  0x70   :  { %760 = vmatprep.mubr.bf16.mxu0 %v208_v60  ;;  %v2162_v21 = vld [vmem:[#allocation8 + $0x1b0] sm:$0xff]   ;;  %v2172_v49 = vld [vmem:[#allocation9 + $0x8] ss:$16 sps:$4 sm:$0xff]   ;;  %v2174_v50 = vld [vmem:[#allocation9 + $0xc] ss:$16 sps:$4 sm:$0xff]  }
  0x71   :  { %1964 = vmatpush3.bf16.msra.mxu0 %v2123_v25  ;;  %v109_v25 = vld [vmem:[#allocation6 + $0x8] sm:$0xff]  ;;  %v2171_v48 = vld [vmem:[#allocation9 + $0x4] ss:$16 sps:$4 sm:$0xff]   ;;  %v2175_v53 = vld [vmem:[#allocation9 + $0x20] ss:$16 sps:$4 sm:$0xff]  }
  0x72   :  { %1986 = vmatpush3.bf16.msra.mxu1 %v2124_v26  ;;  %1965 = vmatprep.subr.bf16.mxu0 %v2125_v27  ;;  %v136_v26 = vrot.slane %v107_v24, %v2547_v35  ;;  %v129_v27 = vcombine.high %v107_v24, %v107_v24  ;;  %v2177_v51 = vld [vmem:[#allocation9 + $0x24] ss:$16 sps:$4 sm:$0xff]   ;;  %v2180_v52 = vld [vmem:[#allocation9 + $0x2c] ss:$16 sps:$4 sm:$0xff]  }
  0x73   :  { %1987 = vmatprep.subr.bf16.mxu1 %v2126_v28  ;;  %v2165_v28 = vld [vmem:[#allocation8 + $0x138] sm:$0xff]   ;;  %v2183_v55 = vld [vmem:[#allocation9 + $0x44] ss:$16 sps:$4 sm:$0xff]  }
  0x74   :  { %v2186_v56 = vld [vmem:[#allocation9 + $0x4c] ss:$16 sps:$4 sm:$0xff]   ;;  %v2189_v60 = vld [vmem:[#allocation9 + $0x64] ss:$16 sps:$4 sm:$0xff]  }
  0x75   :  { %1966 = vmatpush3.bf16.msra.mxu0 %v2127_v31  ;;  %v173_v31 = vcombine.low %v109_v25, %v109_v25  ;;  %v2192_v61 = vld [vmem:[#allocation9 + $0x6c] ss:$16 sps:$4 sm:$0xff]  }
  0x76   :  { %1988 = vmatpush3.bf16.msra.mxu1 %v2128_v32  ;;  %1967 = vmatprep.subr.bf16.mxu0 %v2129_v33  ;;  %v187_v32 = vrot.slane %v109_v25, %v2547_v35  ;;  %v143_v33 = vrot.slane %v129_v27, %v2547_v35 }
  0x77   :  { %1989 = vmatprep.subr.bf16.mxu1 %v2130_v34  ;;  %v144_v34 = vcombine.high %v136_v26, %v136_v26 }
  0x78   :  { %v145_v38 = vcombine.high %v143_v33, %v143_v33  ;;  %v205_v39 = vsel %vm198_vm0, %v143_v33, %v187_v32 }
  0x79   :  { %1968 = vmatpush3.bf16.msra.mxu0 %v2131_v36  ;;  %v180_v36 = vrot.slane %v173_v31, %v2547_v35  ;;  %v213_v43 = vpack.c.bf16 %v205_v39, %v205_v39  ;;  %v2169_v35 = vld [vmem:[#allocation9] ss:$16 sps:$4 sm:$0xff]  }
  0x7a   :  { %1990 = vmatpush3.bf16.msra.mxu1 %v2132_v37  ;;  %1997 = vmatprep.subr.bf16.mxu0 %v2135_v44  ;;  %v189_v37 = vcombine.high %v187_v32, %v187_v32 }
  0x7b   :  { %2019 = vmatprep.subr.bf16.mxu1 %v2136_v45  ;;  %v188_v40 = vcombine.high %v180_v36, %v180_v36  ;;  %v203_v41 = vsel %vm198_vm0, %v136_v26, %v180_v36 }
  0x7c   :  { %761 = vmatmul.mubr.bf16.vlgmr.msra.gmra.mrb[0].mxu0 %v207_v57  ;;  %v206_v42 = vsel %vm198_vm0, %v145_v38, %v189_v37  ;;  %v211_v46 = vpack.c.bf16 %v203_v41, %v203_v41  ;;  %v2181_v57 = vld [vmem:[#allocation9 + $0x40] ss:$16 sps:$4 sm:$0xff]  }
  0x7d   :  { %801 = vmatmul.mubr.bf16.vlgmr.msra.gmra.mrb[0].mxu1 %v209_v58  ;;  %1998 = vmatpush3.bf16.msra.mxu0 %v2137_v54  ;;  %v204_v44 = vsel %vm198_vm0, %v144_v34, %v188_v40  ;;  %v214_v45 = vpack.c.bf16 %v206_v42, %v206_v42  ;;  %v2178_v54 = vld [vmem:[#allocation9 + $0x28] ss:$16 sps:$4 sm:$0xff]  }
  0x7e   :  { %2020 = vmatpush3.bf16.msra.mxu1 %v2138_v59  ;;  %1999 = vmatprep.subr.bf16.mxu0 %v2139_v62  ;;  %v212_v47 = vpack.c.bf16 %v204_v44, %v204_v44  ;;  %v2184_v58 = vld [vmem:[#allocation9 + $0x48] ss:$16 sps:$4 sm:$0xff]   ;;  %v2411_v59 = vmov 0.0   ;;  %v2187_v62 = vld [vmem:[#allocation9 + $0x60] ss:$16 sps:$4 sm:$0xff]  }
  0x7f   :  { %2021 = vmatprep.subr.bf16.mxu1 %v2140_v63  ;;  %880 = vmatprep.mubr.bf16.mxu1 %v214_v45  ;;  %105 = vst [vmem:[#allocation2] sm:$0xf] %v2411_v59  ;;  %v2190_v63 = vld [vmem:[#allocation9 + $0x68] ss:$16 sps:$4 sm:$0xff]   ;;  %v1887_v44 = vld [vmem:[%s2662_s3] ss:$0 sm:$0xff] }
  0x80   :  { %840 = vmatprep.mubr.bf16.mxu0 %v212_v47  ;;  %v2226_v59 = vld [vmem:[#allocation11 + $0xd0] sm:$0xff]  }
  0x81   :  { %2000 = vmatpush3.bf16.msra.mxu0 %v2141_v0  ;;  %v2195_v0 = vld [vmem:[#allocation9 + $0x84] ss:$16 sps:$4 sm:$0xff]  }
  0x82   :  { %2022 = vmatpush3.bf16.msra.mxu1 %v2142_v1  ;;  %2001 = vmatprep.subr.bf16.mxu0 %v2143_v2  ;;  %v2198_v1 = vld [vmem:[#allocation9 + $0x8c] ss:$16 sps:$4 sm:$0xff]   ;;  %v2193_v2 = vld [vmem:[#allocation9 + $0x80] ss:$16 sps:$4 sm:$0xff]  }
  0x83   :  { %2023 = vmatprep.subr.bf16.mxu1 %v2144_v3  ;;  %v2196_v3 = vld [vmem:[#allocation9 + $0x88] ss:$16 sps:$4 sm:$0xff]  }
  0x85   :  { %2002 = vmatpush3.bf16.msra.mxu0 %v2145_v4  ;;  %v2199_v4 = vld [vmem:[#allocation9 + $0xa0] ss:$16 sps:$4 sm:$0xff]  }
  0x86   :  { %2024 = vmatpush3.bf16.msra.mxu1 %v2146_v5  ;;  %2003 = vmatprep.subr.bf16.mxu0 %v2147_v6  ;;  %v2201_v5 = vld [vmem:[#allocation9 + $0xa4] ss:$16 sps:$4 sm:$0xff]   ;;  %v2202_v6 = vld [vmem:[#allocation9 + $0xa8] ss:$16 sps:$4 sm:$0xff]   ;;  %v215_v41 = vld [vmem:[#allocation2] sm:$0xf] }
  0x87   :  { %2025 = vmatprep.subr.bf16.mxu1 %v2148_v7  ;;  %v2204_v7 = vld [vmem:[#allocation9 + $0xac] ss:$16 sps:$4 sm:$0xff]  }
  0x89   :  { %2004 = vmatpush3.bf16.msra.mxu0 %v2149_v8  ;;  %v2207_v8 = vld [vmem:[#allocation9 + $0xc4] ss:$16 sps:$4 sm:$0xff]  }
  0x8a   :  { %2026 = vmatpush3.bf16.msra.mxu1 %v2150_v9  ;;  %2005 = vmatprep.subr.bf16.mxu0 %v2151_v10  ;;  %v2210_v9 = vld [vmem:[#allocation9 + $0xcc] ss:$16 sps:$4 sm:$0xff]   ;;  %v2205_v10 = vld [vmem:[#allocation9 + $0xc0] ss:$16 sps:$4 sm:$0xff]  }
  0x8b   :  { %2027 = vmatprep.subr.bf16.mxu1 %v2152_v11  ;;  %v2208_v11 = vld [vmem:[#allocation9 + $0xc8] ss:$16 sps:$4 sm:$0xff]  }
  0x8d   :  { %2006 = vmatpush3.bf16.msra.mxu0 %v2153_v12  ;;  %v2213_v12 = vld [vmem:[#allocation9 + $0xe4] ss:$16 sps:$4 sm:$0xff]  }
  0x8e   :  { %2028 = vmatpush3.bf16.msra.mxu1 %v2154_v13  ;;  %2007 = vmatprep.subr.bf16.mxu0 %v2155_v14  ;;  %v2216_v13 = vld [vmem:[#allocation9 + $0xec] ss:$16 sps:$4 sm:$0xff]   ;;  %v2412_v14 = vmov 0  }
  0x8f   :  { %2029 = vmatprep.subr.bf16.mxu1 %v2156_v15  ;;  %v2211_v15 = vld [vmem:[#allocation9 + $0xe0] ss:$16 sps:$4 sm:$0xff]  }
  0x91   :  { %2008 = vmatpush3.bf16.msra.mxu0 %v2157_v16  ;;  %v2214_v16 = vld [vmem:[#allocation9 + $0xe8] ss:$16 sps:$4 sm:$0xff]  }
  0x92   :  { %2030 = vmatpush3.bf16.msra.mxu1 %v2158_v17  ;;  %2009 = vmatprep.subr.bf16.mxu0 %v2159_v18 }
  0x93   :  { %2031 = vmatprep.subr.bf16.mxu1 %v2160_v19 }
  0x95   :  { %2010 = vmatpush3.bf16.msra.mxu0 %v2161_v20 }
  0x96   :  { %2032 = vmatpush3.bf16.msra.mxu1 %v2162_v21  ;;  %2011 = vmatprep.subr.bf16.mxu0 %v2163_v22 }
  0x97   :  { %2033 = vmatprep.subr.bf16.mxu1 %v2164_v23 }
  0x99   :  { %2012 = vmatpush3.bf16.msra.mxu0 %v2165_v28 }
  0x9a   :  { %2034 = vmatpush3.bf16.msra.mxu1 %v2166_v29  ;;  %1118 = vmatprep.subr.bf16.mxu0 %v2171_v48 }
  0x9b   :  { %1159 = vmatprep.subr.bf16.mxu1 %v2174_v50  ;;  %v2217_v50 = vld [vmem:[#allocation11 + $0x40] sm:$0xff]  }
  0x9c   :  { %841 = vmatmul.mubr.bf16.vlgmr.msra.gmra.mrb[4].mxu0 %v211_v46 }
  0x9d   :  { %881 = vmatmul.mubr.bf16.vlgmr.msra.gmra.mrb[4].mxu1 %v213_v43  ;;  %1119 = vmatpush1.bf16.msra.mxu0 %v2169_v35 }
  0x9e   :  { %1160 = vmatpush1.bf16.msra.mxu1 %v2172_v49  ;;  %1120 = vmatprep.subr.bf16.mxu0 %v2177_v51  ;;  %v2218_v51 = vld [vmem:[#allocation11 + $0xc0] sm:$0xff]  }
  0x9f   :  { %1161 = vmatprep.subr.bf16.mxu1 %v2180_v52  ;;  %1150 = vmatprep.mubr.bf16.mxu0 %v2412_v14  ;;  %v2219_v52 = vld [vmem:[#allocation11] sm:$0xff]  }
  0xa0   :  { %1191 = vmatprep.mubr.bf16.mxu1 %v2412_v14  ;;  %v2245_v14 = vld [vmem:[#allocation11 + $0x78] sm:$0xff]  }
  0xa1   :  { %1121 = vmatpush1.bf16.msra.mxu0 %v2175_v53  ;;  %v2220_v53 = vld [vmem:[#allocation11 + $0x80] sm:$0xff]  }
  0xa2   :  { %1162 = vmatpush1.bf16.msra.mxu1 %v2178_v54  ;;  %1122 = vmatprep.subr.bf16.mxu0 %v2183_v55  ;;  %v2221_v54 = vld [vmem:[#allocation11 + $0x48] sm:$0xff]  }
  0xa3   :  { %1163 = vmatprep.subr.bf16.mxu1 %v2186_v56  ;;  %v2222_v55 = vld [vmem:[#allocation11 + $0xc8] sm:$0xff]  }
  0xa4   :  { %v2223_v56 = vld [vmem:[#allocation11 + $0x8] sm:$0xff]  }
  0xa5   :  { %1123 = vmatpush1.bf16.msra.mxu0 %v2181_v57  ;;  %v2224_v57 = vld [vmem:[#allocation11 + $0x88] sm:$0xff]  }
  0xa6   :  { %1164 = vmatpush1.bf16.msra.mxu1 %v2184_v58  ;;  %1124 = vmatprep.subr.bf16.mxu0 %v2189_v60  ;;  %v2225_v58 = vld [vmem:[#allocation11 + $0x50] sm:$0xff]  }
  0xa7   :  { %1165 = vmatprep.subr.bf16.mxu1 %v2192_v61  ;;  %v2227_v60 = vld [vmem:[#allocation11 + $0x10] sm:$0xff]  }
  0xa8   :  { %v2228_v61 = vld [vmem:[#allocation11 + $0x90] sm:$0xff]  }
  0xa9   :  { %1125 = vmatpush1.bf16.msra.mxu0 %v2187_v62  ;;  %v2229_v62 = vld [vmem:[#allocation11 + $0x58] sm:$0xff]  }
  0xaa   :  { %1166 = vmatpush1.bf16.msra.mxu1 %v2190_v63  ;;  %1126 = vmatprep.subr.bf16.mxu0 %v2195_v0  ;;  %v2230_v63 = vld [vmem:[#allocation11 + $0xd8] sm:$0xff]  }
  0xab   :  { %1167 = vmatprep.subr.bf16.mxu1 %v2198_v1  ;;  %v2231_v0 = vld [vmem:[#allocation11 + $0x18] sm:$0xff]  }
  0xac   :  { %v2232_v1 = vld [vmem:[#allocation11 + $0x98] sm:$0xff]  }
  0xad   :  { %1127 = vmatpush1.bf16.msra.mxu0 %v2193_v2  ;;  %v2233_v2 = vld [vmem:[#allocation11 + $0x60] sm:$0xff]  }
  0xae   :  { %1168 = vmatpush1.bf16.msra.mxu1 %v2196_v3  ;;  %1128 = vmatprep.subr.bf16.mxu0 %v2201_v5  ;;  %v2234_v3 = vld [vmem:[#allocation11 + $0xe0] sm:$0xff]  }
  0xaf   :  { %1169 = vmatprep.subr.bf16.mxu1 %v2204_v7  ;;  %v2236_v5 = vld [vmem:[#allocation11 + $0xa0] sm:$0xff]   ;;  %v2238_v7 = vld [vmem:[#allocation11 + $0xe8] sm:$0xff]  }
  0xb1   :  { %1129 = vmatpush1.bf16.msra.mxu0 %v2199_v4  ;;  %v2235_v4 = vld [vmem:[#allocation11 + $0x20] sm:$0xff]  }
  0xb2   :  { %1170 = vmatpush1.bf16.msra.mxu1 %v2202_v6  ;;  %1130 = vmatprep.subr.bf16.mxu0 %v2207_v8  ;;  %v2237_v6 = vld [vmem:[#allocation11 + $0x68] sm:$0xff]  }
  0xb3   :  { %1171 = vmatprep.subr.bf16.mxu1 %v2210_v9  ;;  %v2239_v8 = vld [vmem:[#allocation11 + $0x28] sm:$0xff]  }
  0xb4   :  { %v2240_v9 = vld [vmem:[#allocation11 + $0xa8] sm:$0xff]  }
  0xb5   :  { %1131 = vmatpush1.bf16.msra.mxu0 %v2205_v10  ;;  %v2241_v10 = vld [vmem:[#allocation11 + $0x70] sm:$0xff]  }
  0xb6   :  { %1172 = vmatpush1.bf16.msra.mxu1 %v2208_v11  ;;  %1132 = vmatprep.subr.bf16.mxu0 %v2213_v12  ;;  %v2242_v11 = vld [vmem:[#allocation11 + $0xf0] sm:$0xff]  }
  0xb7   :  { %1173 = vmatprep.subr.bf16.mxu1 %v2216_v13  ;;  %v2243_v12 = vld [vmem:[#allocation11 + $0x30] sm:$0xff]  }
  0xb8   :  { %v2244_v13 = vld [vmem:[#allocation11 + $0xb0] sm:$0xff]  }
  0xb9   :  { %1133 = vmatpush1.bf16.msra.mxu0 %v2211_v15  ;;  %v2246_v15 = vld [vmem:[#allocation11 + $0xf8] sm:$0xff]  }
  0xba   :  { %1174 = vmatpush1.bf16.msra.mxu1 %v2214_v16  ;;  %2041 = vmatprep.subr.bf16.mxu0 %v2217_v50  ;;  %v2247_v16 = vld [vmem:[#allocation11 + $0x38] sm:$0xff]  }
  0xbb   :  { %2063 = vmatprep.subr.bf16.mxu1 %v2218_v51 }
 0x14f   :  { %v1969_v17 = vpop.f32.mrb[0].mxu0 }
 0x150   :  { %v1991_v18 = vpop.f32.mrb[0].mxu1  ;;  %v1970_v19 = vpop.f32.mrb[1].mxu0 }
 0x151   :  { %v1992_v20 = vpop.f32.mrb[1].mxu1  ;;  %v1971_v21 = vadd.f32 %v1970_v19, %v1969_v17  ;;  %v1972_v23 = vpop.f32.mrb[2].mxu0  ;;  %v2248_v17 = vld [vmem:[#allocation11 + $0xb8] sm:$0xff]   ;;  %v2579_v19 = vsub.s32 2, %v2544_v30 }
 0x152   :  { %v1993_v22 = vadd.f32 %v1992_v20, %v1991_v18  ;;  %v1994_v24 = vpop.f32.mrb[2].mxu1  ;;  %v1973_v25 = vpop.f32.mrb[3].mxu0  ;;  %v2576_v18 = vsub.s32 0, %v2544_v30  ;;  %v936_v20 = vld [vmem:[%s2664_s5] sm:$0xf] }
 0x153   :  { %v1995_v26 = vpop.f32.mrb[3].mxu1  ;;  %v949_v24 = vrot.slane %v936_v20, %v2579_v19 }
 0x154   :  { %v803_v27 = vadd.f32 %v1993_v22, %v1971_v21  ;;  %v2585_v21 = vsub.s32 1, %v2544_v30  ;;  %v2588_v22 = vsub.s32 3, %v2544_v30  ;;  %v941_v23 = vrot.slane %v936_v20, %v2576_v18 }
 0x156   :  { %v945_v25 = vrot.slane %v936_v20, %v2585_v21  ;;  %v953_v26 = vrot.slane %v936_v20, %v2588_v22 }
 0x16f   :  { %v2013_v29 = vpop.f32.mrb[4].mxu0 }
 0x170   :  { %v2035_v28 = vpop.f32.mrb[4].mxu1  ;;  %v2014_v32 = vpop.f32.mrb[5].mxu0 }
 0x171   :  { %v2036_v31 = vpop.f32.mrb[5].mxu1  ;;  %v2015_v36 = vadd.f32 %v2014_v32, %v2013_v29  ;;  %v2016_v37 = vpop.f32.mrb[6].mxu0 }
 0x172   :  { %v2037_v33 = vadd.f32 %v2036_v31, %v2035_v28  ;;  %v2038_v34 = vpop.f32.mrb[6].mxu1  ;;  %v2017_v39 = vpop.f32.mrb[7].mxu0 }
 0x173   :  { %v2039_v38 = vpop.f32.mrb[7].mxu1  ;;  %v843_v40 = vadd.f32 %v2015_v36, %v803_v27 }
 0x175   :  { %v883_v42 = vadd.f32 %v2037_v33, %v843_v40 }
 0x177   :  { %v888_v43 = vadd.f32 %v883_v42, %v215_v41 }
 0x179   :  { %889 = vst [vmem:[#allocation2] sm:$0xf] %v888_v43 }
 0x180   :  { %v893_v45 = vld [vmem:[#allocation2] sm:$0xf] }
 0x181   :  { %v901_v46 = vadd.f32 %v1887_v44, %v893_v45 }
 0x183   :  { %v2568_v47 = vmax.f32 %v901_v46, 0.0 }
 0x185   :  { %v903_v35 = vpack.c.bf16 %v2568_v47, %v2568_v47  ;;  %v1763_v48 = vmul.f32 %v2568_v47, %v2568_v47 }
 0x187   :  { %1151 = vmatmul.mubr.bf16.vlgmr.msra.gmra.mrb[8].mxu0 %v903_v35  ;;  %1192 = vmatmul.mubr.bf16.vlgmr.msra.gmra.mrb[8].mxu1 %v903_v35  ;;  %v1764_v49 = vsel %vm1200_vm1, %v1763_v48, 0.0 }
 0x188   :  { %1765 = vadd.xlane.f32.xlu0 %v1764_v49  ;;  %2042 = vmatpush3.bf16.msra.mxu0 %v2219_v52 }
 0x189   :  { %2064 = vmatpush3.bf16.msra.mxu1 %v2220_v53  ;;  %2043 = vmatprep.subr.bf16.mxu0 %v2221_v54 }
 0x18a   :  { %2065 = vmatprep.subr.bf16.mxu1 %v2222_v55 }
 0x18c   :  { %2044 = vmatpush3.bf16.msra.mxu0 %v2223_v56 }
 0x18d   :  { %2066 = vmatpush3.bf16.msra.mxu1 %v2224_v57  ;;  %2045 = vmatprep.subr.bf16.mxu0 %v2225_v58 }
 0x18e   :  { %2067 = vmatprep.subr.bf16.mxu1 %v2226_v59 }
 0x190   :  { %2046 = vmatpush3.bf16.msra.mxu0 %v2227_v60 }
 0x191   :  { %2068 = vmatpush3.bf16.msra.mxu1 %v2228_v61  ;;  %2047 = vmatprep.subr.bf16.mxu0 %v2229_v62 }
 0x192   :  { %2069 = vmatprep.subr.bf16.mxu1 %v2230_v63 }
 0x194   :  { %2048 = vmatpush3.bf16.msra.mxu0 %v2231_v0 }
 0x195   :  { %2070 = vmatpush3.bf16.msra.mxu1 %v2232_v1  ;;  %2049 = vmatprep.subr.bf16.mxu0 %v2233_v2 }
 0x196   :  { %2071 = vmatprep.subr.bf16.mxu1 %v2234_v3 }
 0x198   :  { %2050 = vmatpush3.bf16.msra.mxu0 %v2235_v4 }
 0x199   :  { %2072 = vmatpush3.bf16.msra.mxu1 %v2236_v5  ;;  %2051 = vmatprep.subr.bf16.mxu0 %v2237_v6 }
 0x19a   :  { %2073 = vmatprep.subr.bf16.mxu1 %v2238_v7 }
 0x19c   :  { %2052 = vmatpush3.bf16.msra.mxu0 %v2239_v8 }
 0x19d   :  { %2074 = vmatpush3.bf16.msra.mxu1 %v2240_v9  ;;  %2053 = vmatprep.subr.bf16.mxu0 %v2241_v10 }
 0x19e   :  { %2075 = vmatprep.subr.bf16.mxu1 %v2242_v11 }
 0x1a0   :  { %2054 = vmatpush3.bf16.msra.mxu0 %v2243_v12 }
 0x1a1   :  { %2076 = vmatpush3.bf16.msra.mxu1 %v2244_v13  ;;  %2055 = vmatprep.subr.bf16.mxu0 %v2245_v14 }
 0x1a2   :  { %2077 = vmatprep.subr.bf16.mxu1 %v2246_v15 }
 0x1a4   :  { %2056 = vmatpush3.bf16.msra.mxu0 %v2247_v16 }
 0x1a5   :  { %2078 = vmatpush3.bf16.msra.mxu1 %v2248_v17 }
 0x25a   :  { %v1152_v27 = vpop.f32.mrb[8].mxu0  ;;  %v1193_v28 = vpop.f32.mrb[8].mxu1 }
 0x25b   :  { %v2594_v29 = vadd.f32 %v1152_v27, %v941_v23  ;;  %v2596_v31 = vadd.f32 %v1193_v28, %v949_v24  ;;  %v1154_v32 = vpop.f32.mrb[9].mxu0  ;;  %v1195_v33 = vpop.f32.mrb[9].mxu1 }
 0x25c   :  { %v2598_v34 = vadd.f32 %v1154_v32, %v945_v25  ;;  %v2600_v36 = vadd.f32 %v1195_v33, %v953_v26  ;;  %v1156_v37 = vpop.f32.mrb[10].mxu0  ;;  %v1197_v38 = vpop.f32.mrb[10].mxu1 }
 0x25d   :  { %v1201_v39 = vsel %vm1200_vm1, %v2594_v29, 0.0  ;;  %v1233_v40 = vmul.f32 %v2594_v29, %v2594_v29  ;;  %v1215_v41 = vsel %vm1200_vm1, %v2596_v31, 0.0  ;;  %v1235_v42 = vmul.f32 %v2596_v31, %v2596_v31  ;;  %v1157_v43 = vpop.f32.mrb[11].mxu0  ;;  %v1198_v44 = vpop.f32.mrb[11].mxu1 }
 0x25e   :  { %v1202_v45 = vrot.slane %v1201_v39, 4  ;;  %v1216_v46 = vrot.slane %v1215_v41, 4  ;;  %v1208_v35 = vsel %vm1200_vm1, %v2598_v34, 0.0  ;;  %v1234_v48 = vmul.f32 %v2598_v34, %v2598_v34 }
 0x25f   :  { %v1237_v49 = vsel %vm1200_vm1, %v1233_v40, 0.0  ;;  %v1251_v50 = vsel %vm1200_vm1, %v1235_v42, 0.0  ;;  %v1209_v51 = vrot.slane %v1208_v35, 4  ;;  %v1222_v52 = vsel %vm1200_vm1, %v2600_v36, 0.0 }
 0x260   :  { %v1203_v53 = vadd.f32 %v1202_v45, %v1201_v39  ;;  %v1238_v54 = vrot.slane %v1237_v49, 4  ;;  %v1217_v55 = vadd.f32 %v1216_v46, %v1215_v41  ;;  %v1252_v56 = vrot.slane %v1251_v50, 4 }
 0x261   :  { %v1210_v57 = vadd.f32 %v1209_v51, %v1208_v35  ;;  %v1244_v58 = vsel %vm1200_vm1, %v1234_v48, 0.0  ;;  %v1223_v59 = vrot.slane %v1222_v52, 4  ;;  %v1236_v60 = vmul.f32 %v2600_v36, %v2600_v36 }
 0x262   :  { %v1204_v61 = vrot.slane %v1203_v53, 2  ;;  %v1239_v62 = vadd.f32 %v1238_v54, %v1237_v49  ;;  %v1218_v63 = vrot.slane %v1217_v55, 2  ;;  %v1253_v0 = vadd.f32 %v1252_v56, %v1251_v50 }
 0x263   :  { %v1211_v1 = vrot.slane %v1210_v57, 2  ;;  %v1245_v2 = vrot.slane %v1244_v58, 4  ;;  %v1224_v3 = vadd.f32 %v1223_v59, %v1222_v52  ;;  %v1258_v4 = vsel %vm1200_vm1, %v1236_v60, 0.0 }
 0x264   :  { %v1205_v5 = vadd.f32 %v1204_v61, %v1203_v53  ;;  %v1240_v6 = vrot.slane %v1239_v62, 2  ;;  %v1219_v7 = vadd.f32 %v1218_v63, %v1217_v55  ;;  %v1254_v8 = vrot.slane %v1253_v0, 2 }
 0x265   :  { %v1212_v9 = vadd.f32 %v1211_v1, %v1210_v57  ;;  %v1246_v10 = vadd.f32 %v1245_v2, %v1244_v58  ;;  %v1225_v11 = vrot.slane %v1224_v3, 2  ;;  %v1259_v12 = vrot.slane %v1258_v4, 4 }
 0x266   :  { %v1206_v13 = vrot.slane %v1205_v5, 1  ;;  %v1241_v14 = vadd.f32 %v1240_v6, %v1239_v62  ;;  %v1220_v15 = vrot.slane %v1219_v7, 1  ;;  %v1255_v16 = vadd.f32 %v1254_v8, %v1253_v0 }
 0x267   :  { %v1213_v17 = vrot.slane %v1212_v9, 1  ;;  %v1247_v20 = vrot.slane %v1246_v10, 2  ;;  %v1226_v23 = vadd.f32 %v1225_v11, %v1224_v3  ;;  %v1260_v24 = vadd.f32 %v1259_v12, %v1258_v4 }
 0x268   :  { %v1207_v25 = vadd.f32 %v1206_v13, %v1205_v5  ;;  %v1242_v26 = vrot.slane %v1241_v14, 1  ;;  %v1221_v27 = vadd.f32 %v1220_v15, %v1219_v7  ;;  %v1256_v28 = vrot.slane %v1255_v16, 1 }
 0x269   :  { %v1214_v32 = vadd.f32 %v1213_v17, %v1212_v9  ;;  %v1248_v33 = vadd.f32 %v1247_v20, %v1246_v10  ;;  %v1227_v37 = vrot.slane %v1226_v23, 1  ;;  %v1261_v38 = vrot.slane %v1260_v24, 2 }
 0x26a   :  { %v1229_v39 = vmul.f32 0.25, %v1207_v25  ;;  %v1243_v40 = vadd.f32 %v1242_v26, %v1241_v14  ;;  %v1231_v41 = vmul.f32 0.25, %v1221_v27  ;;  %v1257_v42 = vadd.f32 %v1256_v28, %v1255_v16 }
 0x26b   :  { %v1230_v43 = vmul.f32 0.25, %v1214_v32  ;;  %v1249_v44 = vrot.slane %v1248_v33, 1  ;;  %v1228_v45 = vadd.f32 %v1227_v37, %v1226_v23  ;;  %v1262_v46 = vadd.f32 %v1261_v38, %v1260_v24  ;;  %v1281_v24 = vld [vmem:[%s2665_s6] sm:$0xf] }
 0x26c   :  { %v1265_v35 = vmul.f32 0.25, %v1243_v40  ;;  %v1269_v48 = vmul.f32 %v1229_v39, %v1229_v39  ;;  %v1267_v49 = vmul.f32 0.25, %v1257_v42  ;;  %v1271_v50 = vmul.f32 %v1231_v41, %v1231_v41 }
 0x26d   :  { %v1250_v51 = vadd.f32 %v1249_v44, %v1248_v33  ;;  %v1270_v52 = vmul.f32 %v1230_v43, %v1230_v43  ;;  %v1232_v53 = vmul.f32 0.25, %v1228_v45  ;;  %v1263_v54 = vrot.slane %v1262_v46, 1 }
 0x26e   :  { %v1273_v55 = vsub.f32 %v1265_v35, %v1269_v48  ;;  %v1275_v56 = vsub.f32 %v1267_v49, %v1271_v50  ;;  %v2413_v7 = vmov 1966171168  }
 0x26f   :  { %v1266_v57 = vmul.f32 0.25, %v1250_v51  ;;  %v1264_v58 = vadd.f32 %v1263_v54, %v1262_v46  ;;  %v1272_v59 = vmul.f32 %v1232_v53, %v1232_v53  ;;  %v1297_v8 = vunpack.c.l.s4 %v2413_v7 }
 0x270   :  { %v1277_v60 = vmax.f32 %v1273_v55, 0.0  ;;  %v1279_v61 = vmax.f32 %v1275_v56, 0.0 }
 0x271   :  { %v1274_v62 = vsub.f32 %v1266_v57, %v1270_v52  ;;  %v1268_v63 = vmul.f32 0.25, %v1264_v58  ;;  %v1298_v9 = vunpack.c.0.s8 %v1297_v8 }
 0x272   :  { %v1282_v0 = vadd.f32 1e-05, %v1277_v60  ;;  %v1284_v1 = vadd.f32 1e-05, %v1279_v61 }
 0x273   :  { %v1278_v2 = vmax.f32 %v1274_v62, 0.0  ;;  %v1276_v3 = vsub.f32 %v1268_v63, %v1272_v59  ;;  %v1301_v12 = vsub.s32 %v1298_v9, %v2544_v30 }
 0x274   :  { %2249 = vrsqrt.f32 %v1282_v0 }
 0x275   :  { %v1283_v4 = vadd.f32 1e-05, %v1278_v2  ;;  %v1280_v5 = vmax.f32 %v1276_v3, 0.0  ;;  %2251 = vrsqrt.f32 %v1284_v1 }
 0x277   :  { %2253 = vrsqrt.f32 %v1283_v4  ;;  %v1285_v6 = vadd.f32 1e-05, %v1280_v5 }
 0x279   :  { %2255 = vrsqrt.f32 %v1285_v6 }
 0x27e   :  { %v2250_v10 = vpop.eup %2249 }
 0x27f   :  { %v2252_v11 = vpop.eup %2251 }
 0x281   :  { %v2254_v13 = vpop.eup %2253 }
 0x282   :  { %v1294_v14 = vcombine.low %v2250_v10, %v2254_v13 }
 0x283   :  { %v2256_v15 = vpop.eup %2255 }
 0x284   :  { %v1295_v16 = vcombine.low %v2252_v11, %v2256_v15  ;;  %v1302_v17 = vrot.slane %v1294_v14, %v1301_v12  ;;  %v1766_v11 = vpop.xlane.xlu0 %1765 }
 0x286   :  { %v1309_v20 = vrot.slane %v1295_v16, %v1301_v12 }
 0x288   :  { %v1310_v23 = vcombine.low %v1302_v17, %v1309_v20 }
 0x28a   :  { %v1317_v25 = vrot.slane %v1310_v23, %v1301_v12 }
 0x28c   :  { %v1319_v26 = vmul.f32 %v1317_v25, %v1281_v24 }
 0x28e   :  { %v1333_v27 = vrot.slane %v1319_v26, %v2579_v19  ;;  %v1337_v28 = vrot.slane %v1319_v26, %v2588_v22  ;;  %v1325_v32 = vrot.slane %v1319_v26, %v2576_v18  ;;  %v1329_v30 = vrot.slane %v1319_v26, %v2585_v21 }
 0x290   :  { %v1344_v33 = vmul.f32 %v1333_v27, %v1231_v41  ;;  %v1345_v37 = vmul.f32 %v1337_v28, %v1232_v53  ;;  %v1379_v38 = vmul.f32 %v1337_v28, %v2600_v36  ;;  %v1342_v40 = vmul.f32 %v1325_v32, %v1229_v39  ;;  %v1320_v41 = vld [vmem:[%s2666_s7] sm:$0xf] }
 0x291   :  { %v1343_v42 = vmul.f32 %v1329_v30, %v1230_v43  ;;  %v1377_v44 = vmul.f32 %v1329_v30, %v2598_v34  ;;  %v1376_v45 = vmul.f32 %v1325_v32, %v2594_v29  ;;  %v1378_v46 = vmul.f32 %v1333_v27, %v2596_v31 }
 0x292   :  { %v1351_v35 = vcombine.low %v1344_v33, %v1345_v37 }
 0x293   :  { %v1350_v48 = vcombine.low %v1342_v40, %v1343_v42 }
 0x294   :  { %v1365_v49 = vrot.slane %v1351_v35, %v1301_v12 }
 0x295   :  { %v1358_v50 = vrot.slane %v1350_v48, %v1301_v12 }
 0x297   :  { %v1366_v51 = vcombine.low %v1358_v50, %v1365_v49 }
 0x299   :  { %v1373_v52 = vrot.slane %v1366_v51, %v1301_v12  ;;  %v1767_v12 = vmax.f32 %v1766_v11, 1e-24 }
 0x29b   :  { %v1375_v53 = vsub.f32 %v1320_v41, %v1373_v52  ;;  %2257 = vrsqrt.f32 %v1767_v12 }
 0x29d   :  { %v1388_v36 = vrot.slane %v1375_v53, %v2585_v21  ;;  %v1396_v39 = vrot.slane %v1375_v53, %v2588_v22  ;;  %v1384_v34 = vrot.slane %v1375_v53, %v2576_v18  ;;  %v1392_v29 = vrot.slane %v1375_v53, %v2579_v19  ;;  %v1920_v19 = vld [vmem:[%s2668_s9] ss:$0 sm:$0xff]  ;;  %s2414_s9 = smov [#allocation12]  }
 0x29e   :  { %s1812_s14 = sshll.u32 %s2414_s9, 4  ;;  %s1813_s14 = int_to_ptr.vmem [resolvable:$true] %s1812_s14 }
 0x29f   :  { %v1402_v31 = vadd.f32 %v1388_v36, %v1377_v44  ;;  %v1404_v43 = vadd.f32 %v1396_v39, %v1379_v38  ;;  %v1401_v54 = vadd.f32 %v1384_v34, %v1376_v45  ;;  %v1403_v55 = vadd.f32 %v1392_v29, %v1378_v46  ;;  %s2371_s0 = scalar_lea.vmem %s1813_s14, 16  ;;  %s2375_s19 = scalar_lea.vmem %s1813_s14, 32 }
 0x2a0   :  { %p2372_p12 = scmp.ne.s32.totalorder %s1813_s14, %s2371_s0  ;;  %p2376_p13 = scmp.lt.s32.totalorder %s1813_s14, %s1813_s14 }
 0x2a1   :  { %v1406_v56 = vmax.f32 %v1402_v31, 0.0  ;;  %v1408_v57 = vmax.f32 %v1404_v43, 0.0  ;;  %v1405_v58 = vmax.f32 %v1401_v54, 0.0  ;;  %v1407_v59 = vmax.f32 %v1403_v55, 0.0  ;;  %p2377_p0 = scmp.lt.s32.totalorder %s2375_s19, %s2371_s0 }
 0x2a3   :  { %v1410_v60 = vpack.c.bf16 %v1406_v56, %v1406_v56  ;;  %v1412_v61 = vpack.c.bf16 %v1408_v57, %v1408_v57  ;;  %v1409_v62 = vpack.c.bf16 %v1405_v58, %v1405_v58  ;;  %v1411_v63 = vpack.c.bf16 %v1407_v59, %v1407_v59  ;;  %p2378_p1 = por %p2377_p0, %p2376_p13 }
 0x2a5   :  { %1708 = vmatprep.mubr.bf16.mxu0 %v1410_v60  ;;  %1748 = vmatprep.mubr.bf16.mxu1 %v1412_v61  ;;  %v2258_v15 = vpop.eup %2257  ;;  %p2379_p2 = pnand %p2378_p1, %p2372_p12 }
 0x2a6   :  { %1709 = vmatmul.mubr.bf16.vlgmr.msra.gmra.mrb[12].mxu0 %v1409_v62  ;;  %1749 = vmatmul.mubr.bf16.vlgmr.msra.gmra.mrb[12].mxu1 %v1411_v63  ;;  %v1769_v16 = vmul.f32 %v2258_v15, %v2568_v47 }
 0x2a8   :  { %v1779_v23 = vrot.slane %v1769_v16, 6  ;;  %v1771_v25 = vrot.slane %v1769_v16, 2 }
 0x379   :  { %v2057_v21 = vpop.f32.mrb[12].mxu0  ;;  %v2079_v18 = vpop.f32.mrb[12].mxu1 }
 0x37a   :  { %v2058_v22 = vpop.f32.mrb[13].mxu0  ;;  %v2080_v0 = vpop.f32.mrb[13].mxu1 }
 0x37b   :  { %v2059_v1 = vadd.f32 %v2058_v22, %v2057_v21  ;;  %v2081_v2 = vadd.f32 %v2080_v0, %v2079_v18  ;;  %v2060_v3 = vpop.f32.mrb[14].mxu0  ;;  %v2082_v4 = vpop.f32.mrb[14].mxu1 }
 0x37c   :  { %v2061_v5 = vpop.f32.mrb[15].mxu0  ;;  %v2083_v6 = vpop.f32.mrb[15].mxu1 }
 0x37d   :  { %v1711_v7 = vadd.f32 %v2059_v1, %v1920_v19 }
 0x37f   :  { %v1751_v8 = vadd.f32 %v2081_v2, %v1711_v7 }
 0x381   :  { %v1756_v9 = vmul.f32 %v1751_v8, %v1751_v8 }
 0x383   :  { %v1757_v10 = vsel %vm1200_vm1, %v1756_v9, 0.0 }
 0x384   :  { %1758 = vadd.xlane.f32.xlu0 %v1757_v10 }
 0x411   :  { %v1759_v13 = vpop.xlane.xlu0 %1758 }
 0x412   :  { %v1760_v14 = vmax.f32 %v1759_v13, 1e-24 }
 0x414   :  { %2259 = vrsqrt.f32 %v1760_v14 }
 0x41e   :  { %v2260_v17 = vpop.eup %2259 }
 0x41f   :  { %v1762_v20 = vmul.f32 %v2260_v17, %v1751_v8 }
 0x421   :  { %v1781_v24 = vmul.f32 %v1779_v23, %v1762_v20  ;;  %v1773_v27 = vmul.f32 %v1771_v25, %v1762_v20 }
 0x423   :  { %v1783_v26 = vsel %vm1782_vm2, %v1781_v24, 0.0  ;;  %v1774_v28 = vsel %vm198_vm0, %v1773_v27, 0.0 }
 0x424   :  { %1784 = vadd.xlane.f32.xlu1 %v1783_v26 }
 0x428   :  { %1775 = vadd.xlane.f32.xlu1 %v1774_v28 }
 0x4b1   :  { %v1785_v32 = vpop.xlane.xlu1 %1784 }
 0x4b2   :  { %v1786_v30 = vsub.f32 1.0, %v1785_v32 }
 0x4b4   :  { %v1787_v33 = vmul.f32 2.0, %v1786_v30 }
 0x4b5   :  { %v1776_v37 = vpop.xlane.xlu1 %1775 }
 0x4b6   :  { %v1777_v38 = vsub.f32 1.0, %v1776_v37  ;;  %v1789_v40 = vrot.slane %v1787_v33, 2 }
 0x4b8   :  { %v1778_v42 = vmul.f32 2.0, %v1777_v38 }
 0x4ba   :  { %v1791_v47 = vadd.f32 %v1789_v40, %v1778_v42 }
 0x4bc   :  { %v1793_v44 = vsel %vm1792_vm3, %v1791_v47, 0.0 }
 0x4bd   :  { %1794 = vadd.xlane.f32.xlu0 %v1793_v44 }
 0x54a   :  { %v1795_v45 = vpop.xlane.xlu0 %1794 }
 0x54b   :  { %v1796_v46 = vrot.slane %v1795_v45, 4 }
 0x54d   :  { %v1797_v35 = vadd.f32 %v1796_v46, %v1795_v45 }
 0x54f   :  { %v1798_v48 = vrot.slane %v1797_v35, 2 }
 0x551   :  { %v1799_v49 = vadd.f32 %v1798_v48, %v1797_v35 }
 0x553   :  { %v1800_v50 = vrot.slane %v1799_v49, 1 }
 0x555   :  { %v1801_v51 = vadd.f32 %v1800_v50, %v1799_v49 }
 0x557   :  { %2085 = vpush %v1801_v51 }
 0x588   :  { %s2086_s17 = spop %2085 }
 0x589   :  { %s1803_s18 = smul.f32 0.5, %s2086_s17 }
 0x58b   :  { %v1804_v41 = vstv %s1803_s18 }
 0x58c   :  { %1805 = vst [vmem:[#allocation12] sm:$0x1] %v1804_v41 }
 0x58d   :  { %2382 = shalt.err (!%p2379_p2)
}
 0x58e   :  { %s2383_s23 = scalar_lea.hbm %s2669_s10, 16 }
 0x58f   :  { %p2384_p3 = scmp.ne.s32.totalorder %s2669_s10, %s2383_s23  ;;  %p2387_p4 = scmp.lt.u32.totalorder %s2383_s23, %s2669_s10 }
 0x591   :  { %p2389_p5 = pnand %p2387_p4, %p2384_p3 }
 0x593   :  { %2392 = shalt.err (!%p2389_p5)
}
 0x594   :  { %1815 = dma.vmem_to_hbm [thread:$0]  %s1813_s14, 16, %s2669_s10, [#allocation5]  }
 0x595   :  { %2399 = dma.done.wait [#allocation5], 16  }
 0x596   :  { %2400 = vsyncadd [#allocation5], 4294967280 }
 0x597   :  { %1819 = vsyncpa [#allocation4], 1 }
 0x598   :  { %1820 = vsyncpa [#allocation7], 1 }
 0x599   :  { %1821 = vsyncpa [#allocation10], 1 }
 0x59a   :  { %1822 = vsyncpa [#allocation5], 1 }

</bundles_post_ra>
